<compile_context>
chip_gen: v5e
topology: v5e:2x2
jax: 0.10.0
libtpu: 0.0.40
codegen_flags: <defaults>
</compile_context>

<pallas_src>
import functools

import jax
import jax.numpy as jnp
from jax.experimental import pallas as pl
from jax.experimental.pallas import tpu as pltpu


def _loss_kernel(past_ref, fut_ref, out_ref, pz_acc, ce_acc, *, inv_batch):
    i = pl.program_id(0)

    @pl.when(i == 0)
    def _init():
        pz_acc[...] = jnp.zeros_like(pz_acc)
        ce_acc[...] = jnp.zeros_like(ce_acc)

    past = past_ref[...].astype(jnp.float32)   # (tb, C)
    fut = fut_ref[...].astype(jnp.float32)     # (tb, C)

    # softmax(future_rep, dim=1) — numerically stable, classes on lanes.
    fm = jnp.max(fut, axis=-1, keepdims=True)
    fe = jnp.exp(fut - fm)
    pzy = fe / jnp.sum(fe, axis=-1, keepdims=True)               # (tb, C)

    # log_softmax(past_rep, dim=1)
    pm = jnp.max(past, axis=-1, keepdims=True)
    ps = past - pm
    logp = ps - jnp.log(jnp.sum(jnp.exp(ps), axis=-1, keepdims=True))

    # Running reductions over batch tiles (accumulators persist across grid).
    pz_acc[...] += jnp.sum(pzy, axis=0, keepdims=True)           # (1, C): sum_b pZ_Y
    ce_acc[...] += jnp.sum(pzy * logp, keepdims=True)            # (1, 1): sum_{b,c} pZ_Y*logp

    @pl.when(i == pl.num_programs(0) - 1)
    def _finalize():
        pz = pz_acc[...] * inv_batch                             # (1, C) = pZ
        neg_hz = jnp.sum(pz * jnp.log(pz), axis=-1, keepdims=True)  # (1,1) = -H(pZ)
        # loss = -mean_b sum_c pZ_Y * log_softmax(past)  -  H(pZ)
        out_ref[...] = neg_hz - ce_acc[...] * inv_batch


def loss_forward(past_rep, future_rep, *, block_b=8):
    """past_rep, future_rep: f32 [B, C]. Returns scalar loss (f32)."""
    assert past_rep.shape == future_rep.shape
    B, C = past_rep.shape

    # Batch tile: multiple of 8 (sublanes) that divides B, else take whole B.
    tb = block_b if (B % block_b == 0 and block_b % 8 == 0) else B
    grid = (B // tb,)

    kernel = functools.partial(_loss_kernel, inv_batch=float(1.0 / B))

    cost = pl.CostEstimate(
        flops=int(12 * B * C),
        transcendentals=int(2 * B * C + C),
        bytes_accessed=int(4 * (2 * B * C + 1)),
    )

    out = pl.pallas_call(
        kernel,
        out_shape=jax.ShapeDtypeStruct((1, 1), jnp.float32),
        grid_spec=pltpu.PrefetchScalarGridSpec(
            num_scalar_prefetch=0,
            grid=grid,
            in_specs=[
                pl.BlockSpec((tb, C), lambda i: (i, 0)),
                pl.BlockSpec((tb, C), lambda i: (i, 0)),
            ],
            out_specs=pl.BlockSpec((1, 1), lambda i: (0, 0)),
            scratch_shapes=[
                pltpu.VMEM((1, C), jnp.float32),   # sum_b pZ_Y accumulator
                pltpu.VMEM((1, 1), jnp.float32),   # cross-term accumulator
            ],
        ),
        compiler_params=pltpu.CompilerParams(
            # Batch axis carries accumulators -> it is a reduction axis.
            dimension_semantics=("arbitrary",),
        ),
        cost_estimate=cost,
    )(past_rep, future_rep)
    return out[0, 0]


def reference_loss(past_rep, future_rep):
    pZ_Y = jax.nn.softmax(future_rep, axis=1)
    pZ = pZ_Y.mean(0)
    hZ = -jnp.sum(pZ * jnp.log(pZ))
    x = pZ_Y * jax.nn.log_softmax(past_rep, axis=1)
    return -1.0 * x.sum(axis=1).mean() - hZ


if __name__ == "__main__":
    batch, num_classes = 32, 16

    key = jax.random.PRNGKey(0)
    k1, k2 = jax.random.split(key)
    past_rep = jax.random.normal(k1, (batch, num_classes), dtype=jnp.float32)
    future_rep = jax.random.normal(k2, (batch, num_classes), dtype=jnp.float32)

    out = loss_forward(past_rep, future_rep)
    out = jax.block_until_ready(out)

    ref = reference_loss(past_rep, future_rep)
    assert out.shape == ()
    assert jnp.allclose(out, ref, atol=1e-5, rtol=1e-5), (out, ref)

    print("KERNEL_OK")
</pallas_src>

<mosaic_0001>
module attributes {stable_mosaic.version = 11 : i64} {
  func.func @_loss_kernel(%arg0: i32, %arg1: memref<8x16xf32, #tpu.memory_space<vmem>>, %arg2: memref<8x16xf32, #tpu.memory_space<vmem>>, %arg3: memref<1x1xf32, #tpu.memory_space<vmem>>, %arg4: memref<1x16xf32, #tpu.memory_space<vmem>>, %arg5: memref<1x1xf32, #tpu.memory_space<vmem>>) attributes {dimension_semantics = [#tpu.dimension_semantics<arbitrary>], iteration_bounds = array<i64: 4>, scalar_prefetch = 0 : i64, scratch_operands = 2 : i64, tpu.core_type = #tpu.core_type<tc>, window_params = [{transform_indices = @transform_0, window_bounds = array<i64: 8, 16>}, {transform_indices = @transform_1, window_bounds = array<i64: 8, 16>}, {pipeline_mode = #tpu.pipeline_mode<synchronous>, transform_indices = @transform_2, window_bounds = array<i64: 1, 1>}]} {
    %c0_i32 = arith.constant 0 : i32
    %0 = arith.cmpi eq, %arg0, %c0_i32 : i32
    %1 = arith.extui %0 : i1 to i32
    %c0_i32_0 = arith.constant 0 : i32
    %2 = arith.cmpi ne, %1, %c0_i32_0 : i32
    scf.if %2 {
      %cst_18 = arith.constant 0.000000e+00 : f32
      %41 = vector.broadcast %cst_18 : f32 to vector<1x16xf32>
      %c0_19 = arith.constant 0 : index
      %c0_20 = arith.constant 0 : index
      %42 = vector.load %arg4[%c0_19, %c0_20] : memref<1x16xf32, #tpu.memory_space<vmem>>, vector<1x16xf32>
      tpu.vector_store %arg4[%c0_19, %c0_20], %41 {strides = array<i32>} : memref<1x16xf32, #tpu.memory_space<vmem>>, vector<1x16xf32>,
      %cst_21 = arith.constant 0.000000e+00 : f32
      %43 = vector.broadcast %cst_21 : f32 to vector<1x1xf32>
      %c0_22 = arith.constant 0 : index
      %c0_23 = arith.constant 0 : index
      %44 = vector.load %arg5[%c0_22, %c0_23] : memref<1x1xf32, #tpu.memory_space<vmem>>, vector<1x1xf32>
      tpu.vector_store %arg5[%c0_22, %c0_23], %43 {strides = array<i32>} : memref<1x1xf32, #tpu.memory_space<vmem>>, vector<1x1xf32>,
    } else {
    }
    %c0 = arith.constant 0 : index
    %c0_1 = arith.constant 0 : index
    %3 = vector.load %arg1[%c0, %c0_1] : memref<8x16xf32, #tpu.memory_space<vmem>>, vector<8x16xf32>
    %c0_2 = arith.constant 0 : index
    %c0_3 = arith.constant 0 : index
    %4 = vector.load %arg2[%c0_2, %c0_3] : memref<8x16xf32, #tpu.memory_space<vmem>>, vector<8x16xf32>
    %cst = arith.constant dense<0xFF800000> : vector<8xf32>
    %5 = vector.multi_reduction <maximumf>, %4, %cst [1] : vector<8x16xf32> to vector<8xf32>
    %6 = vector.shape_cast %5 : vector<8xf32> to vector<8x1xf32>
    %7 = vector.broadcast %6 : vector<8x1xf32> to vector<8x16xf32>
    %8 = arith.subf %4, %7 : vector<8x16xf32>
    %9 = math.exp %8 : vector<8x16xf32>
    %cst_4 = arith.constant dense<0.000000e+00> : vector<8xf32>
    %10 = vector.multi_reduction <add>, %9, %cst_4 [1] : vector<8x16xf32> to vector<8xf32>
    %11 = vector.shape_cast %10 : vector<8xf32> to vector<8x1xf32>
    %12 = vector.broadcast %11 : vector<8x1xf32> to vector<8x16xf32>
    %13 = arith.divf %9, %12 : vector<8x16xf32>
    %cst_5 = arith.constant dense<0xFF800000> : vector<8xf32>
    %14 = vector.multi_reduction <maximumf>, %3, %cst_5 [1] : vector<8x16xf32> to vector<8xf32>
    %15 = vector.shape_cast %14 : vector<8xf32> to vector<8x1xf32>
    %16 = vector.broadcast %15 : vector<8x1xf32> to vector<8x16xf32>
    %17 = arith.subf %3, %16 : vector<8x16xf32>
    %18 = math.exp %17 : vector<8x16xf32>
    %cst_6 = arith.constant dense<0.000000e+00> : vector<8xf32>
    %19 = vector.multi_reduction <add>, %18, %cst_6 [1] : vector<8x16xf32> to vector<8xf32>
    %20 = vector.shape_cast %19 : vector<8xf32> to vector<8x1xf32>
    %21 = math.log %20 : vector<8x1xf32>
    %22 = vector.broadcast %21 : vector<8x1xf32> to vector<8x16xf32>
    %23 = arith.subf %17, %22 : vector<8x16xf32>
    %c0_7 = arith.constant 0 : index
    %c0_8 = arith.constant 0 : index
    %24 = vector.load %arg4[%c0_7, %c0_8] : memref<1x16xf32, #tpu.memory_space<vmem>>, vector<1x16xf32>
    %cst_9 = arith.constant dense<0.000000e+00> : vector<16xf32>
    %25 = vector.multi_reduction <add>, %13, %cst_9 [0] : vector<8x16xf32> to vector<16xf32>
    %26 = vector.shape_cast %25 : vector<16xf32> to vector<1x16xf32>
    %27 = arith.addf %24, %26 : vector<1x16xf32>
    %c0_10 = arith.constant 0 : index
    %c0_11 = arith.constant 0 : index
    %28 = vector.load %arg4[%c0_10, %c0_11] : memref<1x16xf32, #tpu.memory_space<vmem>>, vector<1x16xf32>
    tpu.vector_store %arg4[%c0_10, %c0_11], %27 {strides = array<i32>} : memref<1x16xf32, #tpu.memory_space<vmem>>, vector<1x16xf32>,
    %c0_12 = arith.constant 0 : index
    %c0_13 = arith.constant 0 : index
    %29 = vector.load %arg5[%c0_12, %c0_13] : memref<1x1xf32, #tpu.memory_space<vmem>>, vector<1x1xf32>
    %30 = arith.mulf %13, %23 : vector<8x16xf32>
    %31 = vector.shape_cast %30 : vector<8x16xf32> to vector<1x8x16xf32>
    %cst_14 = arith.constant dense<0.000000e+00> : vector<1xf32>
    %32 = vector.multi_reduction <add>, %31, %cst_14 [1, 2] : vector<1x8x16xf32> to vector<1xf32>
    %33 = vector.shape_cast %32 : vector<1xf32> to vector<1x1x1xf32>
    %34 = vector.extract %33[0, 0, 0] : f32 from vector<1x1x1xf32>
    %35 = vector.broadcast %34 : f32 to vector<1x1xf32>
    %36 = arith.addf %29, %35 : vector<1x1xf32>
    %c0_15 = arith.constant 0 : index
    %c0_16 = arith.constant 0 : index
    %37 = vector.load %arg5[%c0_15, %c0_16] : memref<1x1xf32, #tpu.memory_space<vmem>>, vector<1x1xf32>
    tpu.vector_store %arg5[%c0_15, %c0_16], %36 {strides = array<i32>} : memref<1x1xf32, #tpu.memory_space<vmem>>, vector<1x1xf32>,
    %c3_i32 = arith.constant 3 : i32
    %38 = arith.cmpi eq, %arg0, %c3_i32 : i32
    %39 = arith.extui %38 : i1 to i32
    %c0_i32_17 = arith.constant 0 : i32
    %40 = arith.cmpi ne, %39, %c0_i32_17 : i32
    scf.if %40 {
      %c0_18 = arith.constant 0 : index
      %c0_19 = arith.constant 0 : index
      %41 = vector.load %arg4[%c0_18, %c0_19] : memref<1x16xf32, #tpu.memory_space<vmem>>, vector<1x16xf32>
      %cst_20 = arith.constant 3.125000e-02 : f32
      %42 = vector.broadcast %cst_20 : f32 to vector<1x16xf32>
      %43 = arith.mulf %41, %42 : vector<1x16xf32>
      %44 = math.log %43 : vector<1x16xf32>
      %45 = arith.mulf %43, %44 : vector<1x16xf32>
      %cst_21 = arith.constant dense<0.000000e+00> : vector<1xf32>
      %46 = vector.multi_reduction <add>, %45, %cst_21 [1] : vector<1x16xf32> to vector<1xf32>
      %47 = vector.shape_cast %46 : vector<1xf32> to vector<1x1xf32>
      %c0_22 = arith.constant 0 : index
      %c0_23 = arith.constant 0 : index
      %48 = vector.load %arg5[%c0_22, %c0_23] : memref<1x1xf32, #tpu.memory_space<vmem>>, vector<1x1xf32>
      %cst_24 = arith.constant 3.125000e-02 : f32
      %49 = vector.broadcast %cst_24 : f32 to vector<1x1xf32>
      %50 = arith.mulf %48, %49 : vector<1x1xf32>
      %51 = arith.subf %47, %50 : vector<1x1xf32>
      %c0_25 = arith.constant 0 : index
      %c0_26 = arith.constant 0 : index
      %52 = vector.load %arg3[%c0_25, %c0_26] : memref<1x1xf32, #tpu.memory_space<vmem>>, vector<1x1xf32>
      tpu.vector_store %arg3[%c0_25, %c0_26], %51 {strides = array<i32>} : memref<1x1xf32, #tpu.memory_space<vmem>>, vector<1x1xf32>,
    } else {
    }
    return
  }
  func.func @transform_0(%arg0: i32) -> (i32, i32) {
    %c0_i32 = arith.constant 0 : i32
    %c0_i32_0 = arith.constant 0 : i32
    return %arg0, %c0_i32 : i32, i32
  }
  func.func @transform_1(%arg0: i32) -> (i32, i32) {
    %c0_i32 = arith.constant 0 : i32
    %c0_i32_0 = arith.constant 0 : i32
    return %arg0, %c0_i32 : i32, i32
  }
  func.func @transform_2(%arg0: i32) -> (i32, i32) {
    %c0_i32 = arith.constant 0 : i32
    %c0_i32_0 = arith.constant 0 : i32
    %c0_i32_1 = arith.constant 0 : i32
    return %c0_i32, %c0_i32_0 : i32, i32
  }
}

</mosaic_0001>

<bundles_post_ra>
// kernel: tpu_custom_call.1
= control target key start
LH: loop header
LB: loop body
LE: loop exit
PB: predicated region body
PF: predicated region fallthrough
CT: control target
= control target key end

     0   :  { %7 = vsyncpa [#allocation5], 0  ;;  %s391_s9 = smov 0   ;;  %s428_s0 = inlined_call_operand.vmem [shape: f32[32,16], index: 0, kind: input, shape index: {}]   ;;  %s429_s1 = inlined_call_operand.vmem [shape: f32[32,16], index: 1, kind: input, shape index: {}]   ;;  %s430_s2 = inlined_call_operand.hbm [shape: f32[1,1], index: 2, kind: output, shape index: {}]  }
   0x1 LB: > { %s397_s10 = sadd.s32 4294967295, %s372_s9   ;;  %p297_p0 = scmp.ge.s32.totalorder %s372_s9, 1  ;;  %s372_s9 = sphi %s391_s9, %s13_s9  }
   0x2   : > { %p116_p1 = scmp.lt.s32.totalorder %s372_s9, 5 }
   0x4   : > { %p117_p2 = pnand %p297_p0, %p116_p1 }
   0x5   : > { %p136_p3 = scmp.lt.s32.totalorder (!%p117_p2), %s397_s10, 3  ;;  %p300_p4 = scmp.ne.s32.totalorder (!%p117_p2), %s397_s10, 0 }
   0x6   : > { %120 = sbr.rel (%p117_p2) target bundleno = 609 (0x261), region = 28 }
   0xb   : > { %s137_s11 = scalar_select %p136_p3, %s397_s10, 3 }
   0xc   : > { %147 = sbr.rel (%p300_p4) target bundleno = 20 (0x14), region = 32 }
   0xd   : > { %s298_s12 = sshll.u32 %s137_s11, 3 }
   0xe   : > { %s139_s15 = scalar_lea.vmem %s428_s0, %s298_s12  ;;  %s143_s18 = scalar_lea.vmem %s429_s1, %s298_s12 }
  0x11   : > { %vm148_vm0 = vcmask 122880   ;;  %vm150_vm1 = vcmask 0   ;;  %v374_v0 = vmov 0.0  }
  0x12   : > { %149 = vst.msk [vmem:[#allocation2] sm:$0x1] %vm148_vm0, %v374_v0 }
  0x13   : > { %151 = vst.msk [vmem:[#allocation3] sm:$0x1] %vm150_vm1, %v374_v0 }
  0x14 PF: > { %v153_v1 = vld [vmem:[%s143_s18] sm:$0xff]  ;;  %vm154_vm2 = vcmask 130048   ;;  %vm200_vm7 = vcmask 122880   ;;  %vm216_vm8 = vcmask 0   ;;  %p301_p5 = scmp.ne.s32.totalorder %s397_s10, 3 }
  0x15   : > { %v155_v2 = vsel %vm154_vm2, %v153_v1, -inf  ;;  %v152_v3 = vld [vmem:[%s139_s15] sm:$0xff] }
  0x16   : > { %156 = vmax.xlane.f32.xlu0 %v155_v2  ;;  %v179_v4 = vsel %vm154_vm2, %v152_v3, -inf }
  0x19   : > { %v191_v39 = vld [vmem:[#allocation2] sm:$0x1] }
  0x1a   : > { %v202_v49 = vld [vmem:[#allocation3] sm:$0x1] }
  0x1e   : > { %180 = vmax.xlane.f32.xlu0 %v179_v4 }
  0x89   : > { %v157_v5 = vpop.xlane.xlu0 %156 }
  0x8a   : > { %v158_v6 = vsub.f32 %v153_v1, %v157_v5 }
  0x8c   : > { %v159_v7 = vmul.f32 1.442695, %v158_v6 }
  0x8e   : > { %324 = vpow2.f32 %v159_v7 }
  0x91   : > { %v181_v8 = vpop.xlane.xlu0 %180 }
  0x92   : > { %v182_v9 = vsub.f32 %v152_v3, %v181_v8 }
  0x94   : > { %v325_v10 = vpop.eup %324  ;;  %v183_v11 = vmul.f32 1.442695, %v182_v9 }
  0x95   : > { %v161_v12 = vsel %vm154_vm2, %v325_v10, 0.0 }
  0x96   : > { %326 = vpow2.f32 %v183_v11  ;;  %162 = vadd.xlane.f32.xlu1 %v161_v12 }
  0x9c   : > { %v327_v13 = vpop.eup %326 }
  0x9d   : > { %v185_v14 = vsel %vm154_vm2, %v327_v13, 0.0 }
  0x9e   : > { %186 = vadd.xlane.f32.xlu1 %v185_v14 }
 0x109   : > { %v163_v15 = vpop.xlane.xlu1 %162 }
 0x10a   : > { %328 = vrcp.f32 %v163_v15  ;;  %v175_v20 = vand.u32 2147483648, %v163_v15  ;;  %v173_v22 = vand.u32 2147483647, %v163_v15  ;;  %vm169_vm4 = vweird.f32 %v163_v15 }
 0x10c   : > { %v176_v25 = vor.u32 1.1754944e-38, %v175_v20  ;;  %vm174_vm6 = vcmp.eq.f32.partialorder %v173_v22, 8.507059e+37 }
 0x110   : > { %v329_v16 = vpop.eup %328 }
 0x111   : > { %v165_v17 = vmul.f32 %v329_v16, %v163_v15  ;;  %v187_v18 = vpop.xlane.xlu1 %186  ;;  %vm170_vm3 = vweird.f32 %v329_v16 }
 0x112   : > { %330 = vlog2.f32 %v187_v18  ;;  %vm171_vm5 = vmor %vm169_vm4, %vm170_vm3 }
 0x113   : > { %v166_v19 = vsub.f32 1.0, %v165_v17 }
 0x115   : > { %v167_v21 = vmul.f32 %v329_v16, %v166_v19 }
 0x117   : > { %v168_v23 = vadd.f32 %v329_v16, %v167_v21 }
 0x118   : > { %v331_v24 = vpop.eup %330 }
 0x119   : > { %v189_v26 = vmul.f32 0.6931472, %v331_v24  ;;  %v172_v27 = vsel %vm171_vm5, %v329_v16, %v168_v23 }
 0x11a   : > { %v177_v28 = vsel %vm174_vm6, %v176_v25, %v172_v27 }
 0x11b   : > { %v190_v29 = vsub.f32 %v182_v9, %v189_v26  ;;  %v178_v30 = vmul.f32 %v325_v10, %v177_v28 }
 0x11d   : > { %v192_v31 = vsel %vm154_vm2, %v178_v30, 0.0  ;;  %v203_v32 = vmul.f32 %v190_v29, %v178_v30 }
 0x11e   : > { %v193_v33 = vrot.slane %v192_v31, 4 }
 0x11f   : > { %v204_v34 = vsel %vm154_vm2, %v203_v32, 0.0 }
 0x120   : > { %v194_v35 = vadd.f32 %v193_v33, %v192_v31  ;;  %205 = vadd.xlane.f32.xlu2 %v204_v34 }
 0x122   : > { %v195_v36 = vrot.slane %v194_v35, 2 }
 0x124   : > { %v196_v37 = vadd.f32 %v195_v36, %v194_v35 }
 0x126   : > { %v197_v38 = vrot.slane %v196_v37, 1 }
 0x128   : > { %v198_v40 = vadd.f32 %v197_v38, %v196_v37 }
 0x12a   : > { %v199_v41 = vadd.f32 %v198_v40, %v191_v39 }
 0x12c   : > { %201 = vst.msk [vmem:[#allocation2] sm:$0x1] %vm200_vm7, %v199_v41 }
 0x193   : > { %v206_v42 = vpop.xlane.xlu2 %205 }
 0x194   : > { %v207_v43 = vrot.slane %v206_v42, 4 }
 0x196   : > { %v208_v44 = vadd.f32 %v207_v43, %v206_v42 }
 0x198   : > { %v209_v45 = vrot.slane %v208_v44, 2 }
 0x19a   : > { %v210_v46 = vadd.f32 %v209_v45, %v208_v44 }
 0x19c   : > { %v211_v47 = vrot.slane %v210_v46, 1 }
 0x19e   : > { %v212_v48 = vadd.f32 %v211_v47, %v210_v46 }
 0x1a0   : > { %306 = vpush %v212_v48 }
 0x1d1   : > { %s307_s19 = spop %306  ;;  %221 = sbr.rel (%p301_p5) target bundleno = 604 (0x25c), region = 36 }
 0x1d2   : > { %v214_v50 = vstv %s307_s19 }
 0x1d3   : > { %v215_v51 = vadd.f32 %v214_v50, %v202_v49 }
 0x1d5   : > { %217 = vst.msk [vmem:[#allocation3] sm:$0x1] %vm216_vm8, %v215_v51 }
 0x1d6   : > { %v222_v52 = vld [vmem:[#allocation2] sm:$0x1] }
 0x1d7   : > { %v223_v53 = vmul.f32 0.03125, %v222_v52 }
 0x1d9   : > { %332 = vlog2.f32 %v223_v53 }
 0x1dc   : > { %v230_v58 = vld [vmem:[#allocation3] sm:$0x1] }
 0x1dd   : > { %v231_v59 = vmul.f32 0.03125, %v230_v58 }
 0x1df   : > { %v333_v54 = vpop.eup %332 }
 0x1e0   : > { %v225_v55 = vmul.f32 0.6931472, %v333_v54 }
 0x1e2   : > { %v226_v56 = vmul.f32 %v225_v55, %v223_v53 }
 0x1e4   : > { %v227_v57 = vsel %vm200_vm7, %v226_v56, 0.0 }
 0x1e5   : > { %228 = vadd.xlane.f32.xlu0 %v227_v57 }
 0x258   : > { %v229_v60 = vpop.xlane.xlu0 %228 }
 0x259   : > { %v232_v61 = vsub.f32 %v229_v60, %v231_v59 }
 0x25b   : > { %233 = vst.msk [vmem:[#allocation4] sm:$0x1] %vm216_vm8, %v232_v61 }
 0x25c PF: > { %p312_p6 = scmp.eq.s32.totalorder %s397_s10, 3  ;;  %s375_s20 = smov [#allocation4]  }
 0x25d   : > { %s240_s21 = sshll.u32 %s375_s20, 4  ;;  %s242_s24 = sshll.u32 %s430_s2, 4  ;;  %s241_s21 = int_to_ptr.vmem [resolvable:$true] %s240_s21  ;;  %s243_s24 = int_to_ptr.hbm [resolvable:$true] %s242_s24 }
 0x25e   : > { %309 = dma.vmem_to_hbm [thread:$0]  (%p312_p6), %s241_s21, 16, %s243_s24, [#allocation5]  }
 0x25f   : > { %367 = dma.done.wait (%p312_p6), [#allocation5], 16  }
 0x260   : > { %369 = vsyncadd (%p312_p6), [#allocation5], 4294967280 }
 0x261 PF: > { %s13_s9 = sadd.s32 1, %s372_s9  }
 0x262   : > { %p10_p7 = scmp.ge.s32.totalorder %s13_s9, 6  }
 0x264   :  { %12 = sbr.rel (!%p10_p7) target bundleno = 1 (0x1), region = 66 }
 0x269   :  { %256 = vsyncpa [#allocation5], 1 }
 0x26a   :  { %258 = vsyncpa [#allocation5 + $0x1], 1 }

</bundles_post_ra>
